<compile_context>
chip_gen: v7x
topology: tpu7x:2x2x1
jax: 0.10.0
libtpu: 0.0.40
codegen_flags: <defaults>
</compile_context>

<pallas_src>
import functools

import jax
import jax.numpy as jnp
from jax.experimental import pallas as pl
from jax.experimental.pallas import tpu as pltpu


def _round_up(x, m):
    return ((x + m - 1) // m) * m


# ----------------------------- kernels --------------------------------------

def linear_kernel(x_ref, w_ref, o_ref):
    # o = x @ w   (bf16 operands, f32 accumulation, bf16 out -> feeds next MXU stage)
    acc = jnp.dot(x_ref[...], w_ref[...], preferred_element_type=jnp.float32)
    o_ref[...] = acc.astype(o_ref.dtype)


def agg_relu_linear_kernel(a_ref, xw_ref, b_ref, wnext_ref, o_ref):
    # h = relu(A_tile @ XW + b)   (f32 elementwise)
    # o = h @ Wnext               (bf16 operands, f32 acc)  -- fuses layer-2 linear
    acc = jnp.dot(a_ref[...], xw_ref[...], preferred_element_type=jnp.float32)
    h = jnp.maximum(acc + b_ref[...], 0.0)
    o_ref[...] = jnp.dot(
        h.astype(wnext_ref.dtype), wnext_ref[...],
        preferred_element_type=jnp.float32,
    ).astype(o_ref.dtype)


def agg_relu_softmax_kernel(a_ref, xw_ref, b_ref, o_ref, *, num_classes):
    # out = softmax(relu(A_tile @ XW2 + b2)) over the real class lanes.
    acc = jnp.dot(a_ref[...], xw_ref[...], preferred_element_type=jnp.float32)
    h = jnp.maximum(acc + b_ref[...], 0.0)
    # mask padded class lanes so they contribute nothing to the row sum
    lane = jax.lax.broadcasted_iota(jnp.int32, h.shape, dimension=1)
    logits = jnp.where(lane < num_classes, h, -jnp.inf)
    m = jnp.max(logits, axis=-1, keepdims=True)
    e = jnp.exp(logits - m)
    denom = jnp.sum(e, axis=-1, keepdims=True)
    o_ref[...] = e * pl.reciprocal(denom, approx=True)   # EUP slot, ~free


# ----------------------------- wrapper ---------------------------------------

def gcn_forward(a_hat, x, w1, b1, w2, b2, *, tm=128):
    """Two-layer GCN forward.  a_hat: [N,N] normalized adjacency, x: [N,F]."""
    N, F = x.shape
    H = w1.shape[1]
    C = w2.shape[1]

    LANE = 128
    Fp = _round_up(F, LANE)
    Hp = _round_up(H, LANE)
    Cp = _round_up(C, LANE)
    tm = max(16, tm)                 # bf16-friendly sublane tile
    Np = _round_up(N, tm)

    f32, bf16 = jnp.float32, jnp.bfloat16

    # zero-pad to lane-dense / tile-aligned shapes; cast MXU operands to bf16
    a_p = jnp.zeros((Np, Np), f32).at[:N, :N].set(a_hat).astype(bf16)
    x_p = jnp.zeros((Np, Fp), f32).at[:N, :F].set(x).astype(bf16)
    w1_p = jnp.zeros((Fp, Hp), f32).at[:F, :H].set(w1).astype(bf16)
    b1_p = jnp.zeros((1, Hp), f32).at[:, :H].set(b1)
    w2_p = jnp.zeros((Hp, Cp), f32).at[:H, :C].set(w2).astype(bf16)
    b2_p = jnp.zeros((1, Cp), f32).at[:, :C].set(b2)

    grid = (Np // tm,)
    par = pltpu.CompilerParams(dimension_semantics=("parallel",))

    row_spec = lambda cols: pl.BlockSpec((tm, cols), lambda i: (i, 0))
    full_spec = lambda shape: pl.BlockSpec(shape, lambda i: (0, 0))

    # ---- XW1 = X @ W1  (row-tiled over nodes) -------------------------------
    xw1 = pl.pallas_call(
        linear_kernel,
        grid=grid,
        in_specs=[row_spec(Fp), full_spec((Fp, Hp))],
        out_specs=row_spec(Hp),
        out_shape=jax.ShapeDtypeStruct((Np, Hp), bf16),
        compiler_params=par,
    )(x_p, w1_p)

    # ---- XW2 = relu(A @ XW1 + b1) @ W2  (row-tiled over A rows) --------------
    xw2 = pl.pallas_call(
        agg_relu_linear_kernel,
        grid=grid,
        in_specs=[row_spec(Np), full_spec((Np, Hp)),
                  full_spec((1, Hp)), full_spec((Hp, Cp))],
        out_specs=row_spec(Cp),
        out_shape=jax.ShapeDtypeStruct((Np, Cp), bf16),
        compiler_params=par,
    )(a_p, xw1, b1_p, w2_p)

    # ---- OUT = softmax(relu(A @ XW2 + b2))  (row-tiled, lane-dense store) ----
    out_p = pl.pallas_call(
        functools.partial(agg_relu_softmax_kernel, num_classes=C),
        grid=grid,
        in_specs=[row_spec(Np), full_spec((Np, Cp)), full_spec((1, Cp))],
        out_specs=row_spec(Cp),
        out_shape=jax.ShapeDtypeStruct((Np, Cp), f32),
        compiler_params=par,
    )(a_p, xw2, b2_p)

    return out_p[:N, :C]


# ----------------------------- glue (plain JAX) -------------------------------

def build_normalized_adjacency(edge_index, num_nodes):
    """Dense D^{-1/2} (A + I) D^{-1/2} from a [2, E] edge_index.

    Uses scatter-add (PyG gcn_norm semantics); message flows src -> dst.
    """
    src, dst = edge_index[0], edge_index[1]
    adj = jnp.zeros((num_nodes, num_nodes), jnp.float32)
    adj = adj.at[dst, src].add(1.0)
    adj = adj + jnp.eye(num_nodes, dtype=jnp.float32)     # self loops
    deg = jnp.sum(adj, axis=1)
    dinv = jnp.where(deg > 0, 1.0 / jnp.sqrt(deg), 0.0)
    return dinv[:, None] * adj * dinv[None, :]


def glorot(key, shape):
    fan_in, fan_out = shape
    limit = jnp.sqrt(6.0 / (fan_in + fan_out))
    return jax.random.uniform(key, shape, jnp.float32, -limit, limit)


def gcn_reference(a_hat, x, w1, b1, w2, b2):
    h1 = jnp.maximum(a_hat @ (x @ w1) + b1, 0.0)
    h2 = jnp.maximum(a_hat @ (h1 @ w2) + b2, 0.0)
    return jax.nn.softmax(h2, axis=1)


if __name__ == "__main__":
    # num_node_features = 16, hidden = 48 (fixed by module), num_classes = 8
    N, F, H, C = 32, 16, 48, 8

    key = jax.random.PRNGKey(0)
    kx, kw1, kw2 = jax.random.split(key, 3)

    x = jax.random.normal(kx, (N, F), jnp.float32)

    # deterministic undirected graph: ring + a few chords (no duplicate edges)
    ring_src = jnp.arange(N)
    ring_dst = (ring_src + 1) % N
    chord_src = jnp.arange(0, N // 2, 4)
    chord_dst = chord_src + N // 2
    src = jnp.concatenate([ring_src, ring_dst, chord_src, chord_dst])
    dst = jnp.concatenate([ring_dst, ring_src, chord_dst, chord_src])
    edge_index = jnp.stack([src, dst]).astype(jnp.int32)

    a_hat = build_normalized_adjacency(edge_index, N)

    # parameters (glorot weights + zero bias, as in GCNConv defaults)
    w1 = glorot(kw1, (F, H))
    b1 = jnp.zeros((1, H), jnp.float32)
    w2 = glorot(kw2, (H, C))
    b2 = jnp.zeros((1, C), jnp.float32)

    run = jax.jit(functools.partial(gcn_forward, tm=16))
    out = jax.block_until_ready(run(a_hat, x, w1, b1, w2, b2))

    # sanity checks (tolerances account for bf16 matmuls + approx reciprocal)
    ref = gcn_reference(a_hat, x, w1, b1, w2, b2)
    assert out.shape == (N, C)
    assert jnp.allclose(jnp.sum(out, axis=1), 1.0, atol=1e-2)
    assert jnp.allclose(out, ref, atol=3e-2)

    print("KERNEL_OK")
</pallas_src>

<mosaic_0001>
module attributes {stable_mosaic.version = 11 : i64} {
  func.func @agg_relu_linear_kernel(%arg0: i32, %arg1: memref<16x32xbf16, #tpu.memory_space<vmem>>, %arg2: memref<32x128xbf16, #tpu.memory_space<vmem>>, %arg3: memref<1x128xf32, #tpu.memory_space<vmem>>, %arg4: memref<128x128xbf16, #tpu.memory_space<vmem>>, %arg5: memref<16x128xbf16, #tpu.memory_space<vmem>>) attributes {dimension_semantics = [#tpu.dimension_semantics<parallel>], iteration_bounds = array<i64: 2>, scalar_prefetch = 0 : i64, scratch_operands = 0 : i64, tpu.core_type = #tpu.core_type<tc>, window_params = [{transform_indices = @transform_0, window_bounds = array<i64: 16, 32>}, {pipeline_mode = #tpu.pipeline_mode<synchronous>, transform_indices = @transform_1, window_bounds = array<i64: 32, 128>}, {pipeline_mode = #tpu.pipeline_mode<synchronous>, transform_indices = @transform_2, window_bounds = array<i64: 1, 128>}, {pipeline_mode = #tpu.pipeline_mode<synchronous>, transform_indices = @transform_3, window_bounds = array<i64: 128, 128>}, {transform_indices = @transform_4, window_bounds = array<i64: 16, 128>}]} {
    %c0 = arith.constant 0 : index
    %c0_0 = arith.constant 0 : index
    %0 = vector.load %arg1[%c0, %c0_0] : memref<16x32xbf16, #tpu.memory_space<vmem>>, vector<16x32xbf16>
    %c0_1 = arith.constant 0 : index
    %c0_2 = arith.constant 0 : index
    %1 = vector.load %arg2[%c0_1, %c0_2] : memref<32x128xbf16, #tpu.memory_space<vmem>>, vector<32x128xbf16>
    %cst = arith.constant dense<0.000000e+00> : vector<16x128xf32>
    %2 = tpu.matmul %0, %1, %cst {dimension_numbers = #tpu.dot_dimension_numbers<[1], [0], [0], [1], [0, 0, 1, 1], [], []>} : vector<16x32xbf16>, vector<32x128xbf16>, vector<16x128xf32> -> vector<16x128xf32>
    %c0_3 = arith.constant 0 : index
    %c0_4 = arith.constant 0 : index
    %3 = vector.load %arg3[%c0_3, %c0_4] : memref<1x128xf32, #tpu.memory_space<vmem>>, vector<1x128xf32>
    %4 = vector.broadcast %3 : vector<1x128xf32> to vector<16x128xf32>
    %5 = arith.addf %2, %4 : vector<16x128xf32>
    %cst_5 = arith.constant 0.000000e+00 : f32
    %6 = vector.broadcast %cst_5 : f32 to vector<16x128xf32>
    %7 = arith.maximumf %5, %6 : vector<16x128xf32>
    %8 = arith.truncf %7 : vector<16x128xf32> to vector<16x128xbf16>
    %c0_6 = arith.constant 0 : index
    %c0_7 = arith.constant 0 : index
    %9 = vector.load %arg4[%c0_6, %c0_7] : memref<128x128xbf16, #tpu.memory_space<vmem>>, vector<128x128xbf16>
    %cst_8 = arith.constant dense<0.000000e+00> : vector<16x128xf32>
    %10 = tpu.matmul %8, %9, %cst_8 {dimension_numbers = #tpu.dot_dimension_numbers<[1], [0], [0], [1], [0, 0, 1, 1], [], []>} : vector<16x128xbf16>, vector<128x128xbf16>, vector<16x128xf32> -> vector<16x128xf32>
    %11 = arith.truncf %10 : vector<16x128xf32> to vector<16x128xbf16>
    %c0_9 = arith.constant 0 : index
    %c0_10 = arith.constant 0 : index
    %12 = vector.load %arg5[%c0_9, %c0_10] : memref<16x128xbf16, #tpu.memory_space<vmem>>, vector<16x128xbf16>
    tpu.vector_store %arg5[%c0_9, %c0_10], %11 {strides = array<i32>} : memref<16x128xbf16, #tpu.memory_space<vmem>>, vector<16x128xbf16>,
    return
  }
  func.func @transform_0(%arg0: i32) -> (i32, i32) {
    %c0_i32 = arith.constant 0 : i32
    %c0_i32_0 = arith.constant 0 : i32
    return %arg0, %c0_i32 : i32, i32
  }
  func.func @transform_1(%arg0: i32) -> (i32, i32) {
    %c0_i32 = arith.constant 0 : i32
    %c0_i32_0 = arith.constant 0 : i32
    %c0_i32_1 = arith.constant 0 : i32
    return %c0_i32, %c0_i32_0 : i32, i32
  }
  func.func @transform_2(%arg0: i32) -> (i32, i32) {
    %c0_i32 = arith.constant 0 : i32
    %c0_i32_0 = arith.constant 0 : i32
    %c0_i32_1 = arith.constant 0 : i32
    return %c0_i32, %c0_i32_0 : i32, i32
  }
  func.func @transform_3(%arg0: i32) -> (i32, i32) {
    %c0_i32 = arith.constant 0 : i32
    %c0_i32_0 = arith.constant 0 : i32
    %c0_i32_1 = arith.constant 0 : i32
    return %c0_i32, %c0_i32_0 : i32, i32
  }
  func.func @transform_4(%arg0: i32) -> (i32, i32) {
    %c0_i32 = arith.constant 0 : i32
    %c0_i32_0 = arith.constant 0 : i32
    return %arg0, %c0_i32 : i32, i32
  }
}

module attributes {stable_mosaic.version = 11 : i64} {
  func.func @linear_kernel(%arg0: i32, %arg1: memref<16x128xbf16, #tpu.memory_space<vmem>>, %arg2: memref<128x128xbf16, #tpu.memory_space<vmem>>, %arg3: memref<16x128xbf16, #tpu.memory_space<vmem>>) attributes {dimension_semantics = [#tpu.dimension_semantics<parallel>], iteration_bounds = array<i64: 2>, scalar_prefetch = 0 : i64, scratch_operands = 0 : i64, tpu.core_type = #tpu.core_type<tc>, window_params = [{transform_indices = @transform_0, window_bounds = array<i64: 16, 128>}, {pipeline_mode = #tpu.pipeline_mode<synchronous>, transform_indices = @transform_1, window_bounds = array<i64: 128, 128>}, {transform_indices = @transform_2, window_bounds = array<i64: 16, 128>}]} {
    %c0 = arith.constant 0 : index
    %c0_0 = arith.constant 0 : index
    %0 = vector.load %arg1[%c0, %c0_0] : memref<16x128xbf16, #tpu.memory_space<vmem>>, vector<16x128xbf16>
    %c0_1 = arith.constant 0 : index
    %c0_2 = arith.constant 0 : index
    %1 = vector.load %arg2[%c0_1, %c0_2] : memref<128x128xbf16, #tpu.memory_space<vmem>>, vector<128x128xbf16>
    %cst = arith.constant dense<0.000000e+00> : vector<16x128xf32>
    %2 = tpu.matmul %0, %1, %cst {dimension_numbers = #tpu.dot_dimension_numbers<[1], [0], [0], [1], [0, 0, 1, 1], [], []>} : vector<16x128xbf16>, vector<128x128xbf16>, vector<16x128xf32> -> vector<16x128xf32>
    %3 = arith.truncf %2 : vector<16x128xf32> to vector<16x128xbf16>
    %c0_3 = arith.constant 0 : index
    %c0_4 = arith.constant 0 : index
    %4 = vector.load %arg3[%c0_3, %c0_4] : memref<16x128xbf16, #tpu.memory_space<vmem>>, vector<16x128xbf16>
    tpu.vector_store %arg3[%c0_3, %c0_4], %3 {strides = array<i32>} : memref<16x128xbf16, #tpu.memory_space<vmem>>, vector<16x128xbf16>,
    return
  }
  func.func @transform_0(%arg0: i32) -> (i32, i32) {
    %c0_i32 = arith.constant 0 : i32
    %c0_i32_0 = arith.constant 0 : i32
    return %arg0, %c0_i32 : i32, i32
  }
  func.func @transform_1(%arg0: i32) -> (i32, i32) {
    %c0_i32 = arith.constant 0 : i32
    %c0_i32_0 = arith.constant 0 : i32
    %c0_i32_1 = arith.constant 0 : i32
    return %c0_i32, %c0_i32_0 : i32, i32
  }
  func.func @transform_2(%arg0: i32) -> (i32, i32) {
    %c0_i32 = arith.constant 0 : i32
    %c0_i32_0 = arith.constant 0 : i32
    return %arg0, %c0_i32 : i32, i32
  }
}

module attributes {stable_mosaic.version = 11 : i64} {
  func.func @agg_relu_softmax_kernel(%arg0: i32, %arg1: memref<16x32xbf16, #tpu.memory_space<vmem>>, %arg2: memref<32x128xbf16, #tpu.memory_space<vmem>>, %arg3: memref<1x128xf32, #tpu.memory_space<vmem>>, %arg4: memref<16x128xf32, #tpu.memory_space<vmem>>) attributes {dimension_semantics = [#tpu.dimension_semantics<parallel>], iteration_bounds = array<i64: 2>, scalar_prefetch = 0 : i64, scratch_operands = 0 : i64, tpu.core_type = #tpu.core_type<tc>, window_params = [{transform_indices = @transform_0, window_bounds = array<i64: 16, 32>}, {pipeline_mode = #tpu.pipeline_mode<synchronous>, transform_indices = @transform_1, window_bounds = array<i64: 32, 128>}, {pipeline_mode = #tpu.pipeline_mode<synchronous>, transform_indices = @transform_2, window_bounds = array<i64: 1, 128>}, {transform_indices = @transform_3, window_bounds = array<i64: 16, 128>}]} {
    %c0 = arith.constant 0 : index
    %c0_0 = arith.constant 0 : index
    %0 = vector.load %arg1[%c0, %c0_0] : memref<16x32xbf16, #tpu.memory_space<vmem>>, vector<16x32xbf16>
    %c0_1 = arith.constant 0 : index
    %c0_2 = arith.constant 0 : index
    %1 = vector.load %arg2[%c0_1, %c0_2] : memref<32x128xbf16, #tpu.memory_space<vmem>>, vector<32x128xbf16>
    %cst = arith.constant dense<0.000000e+00> : vector<16x128xf32>
    %2 = tpu.matmul %0, %1, %cst {dimension_numbers = #tpu.dot_dimension_numbers<[1], [0], [0], [1], [0, 0, 1, 1], [], []>} : vector<16x32xbf16>, vector<32x128xbf16>, vector<16x128xf32> -> vector<16x128xf32>
    %c0_3 = arith.constant 0 : index
    %c0_4 = arith.constant 0 : index
    %3 = vector.load %arg3[%c0_3, %c0_4] : memref<1x128xf32, #tpu.memory_space<vmem>>, vector<1x128xf32>
    %4 = vector.broadcast %3 : vector<1x128xf32> to vector<16x128xf32>
    %5 = arith.addf %2, %4 : vector<16x128xf32>
    %cst_5 = arith.constant 0.000000e+00 : f32
    %6 = vector.broadcast %cst_5 : f32 to vector<16x128xf32>
    %7 = arith.maximumf %5, %6 : vector<16x128xf32>
    %8 = tpu.iota {dimensions = array<i32: 1>} : vector<16x128xi32>
    %c8_i32 = arith.constant 8 : i32
    %9 = vector.broadcast %c8_i32 : i32 to vector<16x128xi32>
    %10 = arith.cmpi slt, %8, %9 : vector<16x128xi32>
    %cst_6 = arith.constant 0xFF800000 : f32
    %11 = vector.broadcast %cst_6 : f32 to vector<16x128xf32>
    %12 = arith.select %10, %7, %11 : vector<16x128xi1>, vector<16x128xf32>
    %cst_7 = arith.constant dense<0xFF800000> : vector<16xf32>
    %13 = vector.multi_reduction <maximumf>, %12, %cst_7 [1] : vector<16x128xf32> to vector<16xf32>
    %14 = vector.shape_cast %13 : vector<16xf32> to vector<16x1xf32>
    %15 = vector.broadcast %14 : vector<16x1xf32> to vector<16x128xf32>
    %16 = arith.subf %12, %15 : vector<16x128xf32>
    %17 = math.exp %16 : vector<16x128xf32>
    %cst_8 = arith.constant dense<0.000000e+00> : vector<16xf32>
    %18 = vector.multi_reduction <add>, %17, %cst_8 [1] : vector<16x128xf32> to vector<16xf32>
    %19 = vector.shape_cast %18 : vector<16xf32> to vector<16x1xf32>
    %20 = tpu.reciprocal %19 {approx = true} : vector<16x1xf32> -> vector<16x1xf32>
    %21 = vector.broadcast %20 : vector<16x1xf32> to vector<16x128xf32>
    %22 = arith.mulf %17, %21 : vector<16x128xf32>
    %c0_9 = arith.constant 0 : index
    %c0_10 = arith.constant 0 : index
    %23 = vector.load %arg4[%c0_9, %c0_10] : memref<16x128xf32, #tpu.memory_space<vmem>>, vector<16x128xf32>
    tpu.vector_store %arg4[%c0_9, %c0_10], %22 {strides = array<i32>} : memref<16x128xf32, #tpu.memory_space<vmem>>, vector<16x128xf32>,
    return
  }
  func.func @transform_0(%arg0: i32) -> (i32, i32) {
    %c0_i32 = arith.constant 0 : i32
    %c0_i32_0 = arith.constant 0 : i32
    return %arg0, %c0_i32 : i32, i32
  }
  func.func @transform_1(%arg0: i32) -> (i32, i32) {
    %c0_i32 = arith.constant 0 : i32
    %c0_i32_0 = arith.constant 0 : i32
    %c0_i32_1 = arith.constant 0 : i32
    return %c0_i32, %c0_i32_0 : i32, i32
  }
  func.func @transform_2(%arg0: i32) -> (i32, i32) {
    %c0_i32 = arith.constant 0 : i32
    %c0_i32_0 = arith.constant 0 : i32
    %c0_i32_1 = arith.constant 0 : i32
    return %c0_i32, %c0_i32_0 : i32, i32
  }
  func.func @transform_3(%arg0: i32) -> (i32, i32) {
    %c0_i32 = arith.constant 0 : i32
    %c0_i32_0 = arith.constant 0 : i32
    return %arg0, %c0_i32 : i32, i32
  }
}

</mosaic_0001>

<bundles_post_ra>
// kernel: gcn_forward.3
= control target key start
LH: loop header
LB: loop body
LE: loop exit
PB: predicated region body
PF: predicated region fallthrough
CT: control target
= control target key end

     0   :  { %s429_s9 = smov 0   ;;  %s470_s0 = inlined_call_operand.vmem [shape: bf16[32,128], index: 0, kind: input, shape index: {}]   ;;  %s471_s1 = inlined_call_operand.vmem [shape: bf16[128,128], index: 1, kind: input, shape index: {}]   ;;  %s472_s2 = inlined_call_operand.vmem [shape: bf16[32,128], index: 2, kind: output, shape index: {}]  }
   0x1 LB: > { %s327_s10 = sadd.s32 4294967295, %s410_s9   ;;  %p331_p0 = scmp.ge.s32.totalorder %s410_s9, 1  ;;  %s410_s9 = sphi %s429_s9, %s12_s9  }
   0x2   : > { %p113_p1 = scmp.lt.s32.totalorder %s410_s9, 3 }
   0x4   : > { %p114_p2 = pnand %p331_p0, %p113_p1 }
   0x5   : > { %v395_v0 = vld [vmem:[%s471_s1] sm:$0xff] (!%p114_p2)   ;;  %v412_v1 = vmov (!%p114_p2), 0.0   ;;  %v396_v2 = vld [vmem:[%s471_s1 + $0x8] sm:$0xff] (!%p114_p2)   ;;  %vm413_vm0 = vmmov (!%p114_p2), 0   ;;  %s332_s15 = sshll.u32 (!%p114_p2), %s327_s10, 1  ;;  %v397_v3 = vld [vmem:[%s471_s1 + $0x10] sm:$0xff] (!%p114_p2)  }
   0x6   : > { %117 = sbr.rel (%p114_p2) target bundleno = 255 (0xff), region = 28  ;;  %365 = vmatprep.subr.bf16.mxu0 (!%p114_p2), %v412_v1  ;;  %381 = vmatprep.mubr.msk.bf16.mxu0 (!%p114_p2), %vm413_vm0, %v412_v1  ;;  %p136_p3 = scmp.lt.s32.totalorder (!%p114_p2), %s332_s15, 3  ;;  %v398_v4 = vld [vmem:[%s471_s1 + $0x18] sm:$0xff] (!%p114_p2)   ;;  %v399_v5 = vld [vmem:[%s471_s1 + $0x20] sm:$0xff] (!%p114_p2)   ;;  %v400_v6 = vld [vmem:[%s471_s1 + $0x28] sm:$0xff] (!%p114_p2)  }
   0x7   : > { %366 = vmatpush3.bf16.msra.mxu0 (!%p114_p2), %v395_v0  ;;  %v401_v7 = vld [vmem:[%s471_s1 + $0x30] sm:$0xff] (!%p114_p2)   ;;  %v402_v8 = vld [vmem:[%s471_s1 + $0x38] sm:$0xff] (!%p114_p2)  }
   0x8   : > { %367 = vmatprep.subr.bf16.mxu0 (!%p114_p2), %v412_v1 }
   0xb   : > { %368 = vmatpush3.bf16.msra.mxu0 (!%p114_p2), %v396_v2 }
   0xc   : > { %369 = vmatprep.subr.bf16.mxu0 (!%p114_p2), %v412_v1 }
   0xd   : > { %s474_s15 = smov (!%p136_p3, %s332_s15), 3 }
   0xe   : > { %s333_s18 = sshll.u32 %s474_s15, 2 }
   0xf   : > { %s139_s21 = scalar_lea.vmem %s470_s0, %s333_s18  ;;  %370 = vmatpush3.bf16.msra.mxu0 %v397_v3  ;;  %s145_s6 = scalar_lea.vmem %s472_s2, %s333_s18 }
  0x10   : > { %371 = vmatprep.subr.bf16.mxu0 %v412_v1  ;;  %v403_v9 = vld [vmem:[%s139_s21] sm:$0xff]  }
  0x13   : > { %372 = vmatpush3.bf16.msra.mxu0 %v398_v4 }
  0x14   : > { %373 = vmatprep.subr.bf16.mxu0 %v412_v1 }
  0x17   : > { %374 = vmatpush3.bf16.msra.mxu0 %v399_v5 }
  0x18   : > { %375 = vmatprep.subr.bf16.mxu0 %v412_v1 }
  0x1b   : > { %376 = vmatpush3.bf16.msra.mxu0 %v400_v6 }
  0x1c   : > { %377 = vmatprep.subr.bf16.mxu0 %v412_v1 }
  0x1f   : > { %378 = vmatpush3.bf16.msra.mxu0 %v401_v7 }
  0x20   : > { %379 = vmatprep.subr.bf16.mxu0 %v412_v1 }
  0x23   : > { %380 = vmatpush3.bf16.msra.mxu0 %v402_v8 }
  0x26   : > { %382 = vmatmul.mubr.bf16.vlgmr.msra.gmra.mrb[0].mxu0 %v403_v9 }
  0xf9   : > { %v254_v10 = vpop.f32.mrb[0].mxu0 }
  0xfa   : > { %v383_v11 = vpop.f32.mrb[1].mxu0 }
  0xfb   : > { %v257_v12 = vpop.f32.mrb[2].mxu0 }
  0xfc   : > { %v354_v13 = vpack.c.bf16 %v257_v12, %v254_v10  ;;  %v384_v14 = vpop.f32.mrb[3].mxu0 }
  0xfe   : > { %355 = vst [vmem:[%s145_s6] sm:$0xff] %v354_v13  }
  0xff PF: > { %s12_s9 = sadd.s32 1, %s410_s9  }
 0x100   : > { %p9_p4 = scmp.ge.s32.totalorder %s12_s9, 4  }
 0x102   :  { %11 = sbr.rel (!%p9_p4) target bundleno = 1 (0x1), region = 58 }

// kernel: gcn_forward.5
= control target key start
LH: loop header
LB: loop body
LE: loop exit
PB: predicated region body
PF: predicated region fallthrough
CT: control target
= control target key end

     0   :  { %s411_s12 = smov 0   ;;  %s441_s0 = inlined_call_operand.vmem [shape: bf16[32,32], index: 0, kind: input, shape index: {}]   ;;  %s442_s1 = inlined_call_operand.vmem [shape: bf16[32,128], index: 1, kind: input, shape index: {}]   ;;  %s443_s2 = inlined_call_operand.vmem [shape: f32[1,128], index: 2, kind: input, shape index: {}]   ;;  %s444_s3 = inlined_call_operand.vmem [shape: f32[32,128], index: 3, kind: output, shape index: {}]  }
   0x1 LB: > { %s333_s13 = sadd.s32 4294967295, %s387_s12   ;;  %p337_p0 = scmp.ge.s32.totalorder %s387_s12, 1  ;;  %s387_s12 = sphi %s411_s12, %s13_s12  }
   0x2   : > { %p138_p1 = scmp.lt.s32.totalorder %s387_s12, 3 }
   0x4   : > { %p139_p2 = pnand %p337_p0, %p138_p1 }
   0x5   : > { %v370_v0 = vld [vmem:[%s442_s1] sm:$0xff] (!%p139_p2)   ;;  %v389_v1 = vmov (!%p139_p2), 0.0   ;;  %v371_v2 = vld [vmem:[%s442_s1 + $0x8] sm:$0xff] (!%p139_p2)   ;;  %vm390_vm0 = vmmov (!%p139_p2), 0   ;;  %s338_s18 = sshll.u32 (!%p139_p2), %s333_s13, 1  ;;  %vm205_vm1 = vcmask (!%p139_p2), 261120   ;;  %v252_v4 = vlaneseq (!%p139_p2) }
   0x6   : > { %142 = sbr.rel (%p139_p2) target bundleno = 551 (0x227), region = 32  ;;  %352 = vmatprep.subr.bf16.mxu0 (!%p139_p2), %v389_v1  ;;  %356 = vmatprep.mubr.msk.bf16.mxu0 (!%p139_p2), %vm390_vm0, %v389_v1  ;;  %p163_p3 = scmp.lt.s32.totalorder (!%p139_p2), %s338_s18, 3  ;;  %v342_v5 = vld [vmem:[%s443_s2] ss:$0 sm:$0xff] (!%p139_p2) }
   0x7   : > { %353 = vmatpush3.bf16.msra.mxu0 (!%p139_p2), %v370_v0  ;;  %v253_v6 = vand.u32 (!%p139_p2), 127, %v252_v4 }
   0x8   : > { %354 = vmatprep.subr.bf16.mxu0 (!%p139_p2), %v389_v1 }
   0x9   : > { %vm254_vm2 = vcmp.lt.s32.totalorder (!%p139_p2), %v253_v6, 8 }
   0xb   : > { %355 = vmatpush3.bf16.msra.mxu0 (!%p139_p2), %v371_v2 }
   0xd   : > { %s446_s18 = smov (!%p163_p3, %s338_s18), 3 }
   0xe   : > { %s339_s19 = sshll.u32 %s446_s18, 2  ;;  %s341_s25 = sshll.u32 %s446_s18, 3 }
   0xf   : > { %s166_s22 = scalar_lea.vmem %s441_s0, %s339_s19  ;;  %s172_s28 = scalar_lea.vmem %s444_s3, %s341_s25 }
  0x10   : > { %v372_v3 = vld [vmem:[%s166_s22] sm:$0xff]  }
  0x11   : > { %357 = vmatmul.mubr.msk.bf16.vlgmr.msra.gmra.mrb[0].mxu0 %vm205_vm1, %v372_v3 }
  0xe4   : > { %v243_v7 = vpop.f32.mrb[0].mxu0 }
  0xe5   : > { %v244_v8 = vadd.f32 %v342_v5, %v243_v7  ;;  %v358_v9 = vpop.f32.mrb[1].mxu0 }
  0xe6   : > { %v246_v10 = vpop.f32.mrb[2].mxu0 }
  0xe7   : > { %v250_v11 = vmax.f32 %v244_v8, 0.0  ;;  %v247_v12 = vadd.f32 %v342_v5, %v246_v10  ;;  %v359_v13 = vpop.f32.mrb[3].mxu0 }
  0xe9   : > { %v251_v14 = vmax.f32 %v247_v12, 0.0  ;;  %v255_v15 = vsel %vm254_vm2, %v250_v11, -inf }
  0xea   : > { %257 = vmax.xlane.f32.xlu0 %v255_v15 }
  0xeb   : > { %v256_v16 = vsel %vm254_vm2, %v251_v14, -inf }
  0xee   : > { %259 = vmax.xlane.f32.xlu0 %v256_v16 }
 0x177   : > { %v258_v17 = vpop.xlane.xlu0 %257 }
 0x178   : > { %v261_v18 = vsub.f32 %v255_v15, %v258_v17 }
 0x17a   : > { %v263_v19 = vmul.f32 1.442695, %v261_v18 }
 0x17b   : > { %v260_v20 = vpop.xlane.xlu0 %259 }
 0x17c   : > { %373 = vpow2.f32 %v263_v19  ;;  %v262_v21 = vsub.f32 %v256_v16, %v260_v20 }
 0x17e   : > { %v265_v22 = vmul.f32 1.442695, %v262_v21 }
 0x180   : > { %375 = vpow2.f32 %v265_v22 }
 0x186   : > { %v374_v23 = vpop.eup %373 }
 0x187   : > { %267 = vadd.xlane.f32.xlu1 %v374_v23 }
 0x18a   : > { %v376_v24 = vpop.eup %375 }
 0x18b   : > { %269 = vadd.xlane.f32.xlu1 %v376_v24 }
 0x214   : > { %v268_v25 = vpop.xlane.xlu1 %267 }
 0x215   : > { %377 = vrcp.f32 %v268_v25 }
 0x218   : > { %v270_v26 = vpop.xlane.xlu1 %269 }
 0x219   : > { %379 = vrcp.f32 %v270_v26 }
 0x21f   : > { %v378_v27 = vpop.eup %377 }
 0x220   : > { %v273_v28 = vmul.f32 %v378_v27, %v374_v23 }
 0x222   : > { %275 = vst [vmem:[%s172_s28] sm:$0xff] %v273_v28 }
 0x223   : > { %v380_v29 = vpop.eup %379 }
 0x224   : > { %v274_v30 = vmul.f32 %v380_v29, %v376_v24 }
 0x226   : > { %276 = vst [vmem:[%s172_s28 + $0x8] sm:$0xff] %v274_v30 }
 0x227 PF: > { %s13_s12 = sadd.s32 1, %s387_s12  }
 0x228   : > { %p10_p4 = scmp.ge.s32.totalorder %s13_s12, 4  }
 0x22a   :  { %12 = sbr.rel (!%p10_p4) target bundleno = 1 (0x1), region = 62 }

// kernel: gcn_forward.4
= control target key start
LH: loop header
LB: loop body
LE: loop exit
PB: predicated region body
PF: predicated region fallthrough
CT: control target
= control target key end

     0   :  { %s580_s15 = smov 0   ;;  %s637_s0 = inlined_call_operand.vmem [shape: bf16[32,32], index: 0, kind: input, shape index: {}]   ;;  %s638_s1 = inlined_call_operand.vmem [shape: bf16[32,128], index: 1, kind: input, shape index: {}]   ;;  %s639_s2 = inlined_call_operand.vmem [shape: f32[1,128], index: 2, kind: input, shape index: {}]   ;;  %s640_s3 = inlined_call_operand.vmem [shape: bf16[128,128], index: 3, kind: input, shape index: {}]   ;;  %s641_s4 = inlined_call_operand.vmem [shape: bf16[32,128], index: 4, kind: output, shape index: {}]  }
   0x1 LB: > { %s451_s16 = sadd.s32 4294967295, %s551_s15   ;;  %p455_p0 = scmp.ge.s32.totalorder %s551_s15, 1  ;;  %s551_s15 = sphi %s580_s15, %s14_s15  }
   0x2   : > { %p163_p1 = scmp.lt.s32.totalorder %s551_s15, 3 }
   0x4   : > { %p164_p2 = pnand %p455_p0, %p163_p1 }
   0x5   : > { %v534_v0 = vld [vmem:[%s638_s1] sm:$0xff] (!%p164_p2)   ;;  %v553_v1 = vmov (!%p164_p2), 0.0   ;;  %v535_v2 = vld [vmem:[%s638_s1 + $0x8] sm:$0xff] (!%p164_p2)   ;;  %vm554_vm0 = vmmov (!%p164_p2), 0   ;;  %s456_s21 = sshll.u32 (!%p164_p2), %s451_s16, 1  ;;  %vm232_vm1 = vcmask (!%p164_p2), 261120  }
   0x6   : > { %167 = sbr.rel (%p164_p2) target bundleno = 454 (0x1c6), region = 36  ;;  %496 = vmatprep.subr.bf16.mxu0 (!%p164_p2), %v553_v1  ;;  %504 = vmatprep.subr.bf16.mxu1 (!%p164_p2), %v553_v1  ;;  %p190_p3 = scmp.lt.s32.totalorder (!%p164_p2), %s456_s21, 3  ;;  %v537_v3 = vld [vmem:[%s640_s3] sm:$0xff] (!%p164_p2)   ;;  %v538_v4 = vld [vmem:[%s640_s3 + $0x8] sm:$0xff] (!%p164_p2)   ;;  %v539_v5 = vld [vmem:[%s640_s3 + $0x10] sm:$0xff] (!%p164_p2)  }
   0x7   : > { %497 = vmatpush3.bf16.msra.mxu0 (!%p164_p2), %v534_v0  ;;  %500 = vmatprep.mubr.msk.bf16.mxu0 (!%p164_p2), %vm554_vm0, %v553_v1  ;;  %v540_v7 = vld [vmem:[%s640_s3 + $0x18] sm:$0xff] (!%p164_p2)   ;;  %v541_v8 = vld [vmem:[%s640_s3 + $0x20] sm:$0xff] (!%p164_p2)   ;;  %v542_v9 = vld [vmem:[%s640_s3 + $0x28] sm:$0xff] (!%p164_p2)  }
   0x8   : > { %498 = vmatprep.subr.bf16.mxu0 (!%p164_p2), %v553_v1  ;;  %520 = vmatprep.mubr.msk.bf16.mxu1 (!%p164_p2), %vm554_vm0, %v553_v1  ;;  %v543_v10 = vld [vmem:[%s640_s3 + $0x30] sm:$0xff] (!%p164_p2)   ;;  %v544_v11 = vld [vmem:[%s640_s3 + $0x38] sm:$0xff] (!%p164_p2)   ;;  %v460_v12 = vld [vmem:[%s639_s2] ss:$0 sm:$0xff] (!%p164_p2) }
   0x9   : > { %505 = vmatpush3.bf16.msra.mxu1 (!%p164_p2), %v537_v3 }
   0xa   : > { %506 = vmatprep.subr.bf16.mxu1 (!%p164_p2), %v553_v1 }
   0xb   : > { %499 = vmatpush3.bf16.msra.mxu0 (!%p164_p2), %v535_v2 }
   0xd   : > { %s643_s21 = smov (!%p190_p3, %s456_s21), 3  ;;  %507 = vmatpush3.bf16.msra.mxu1 %v538_v4 }
   0xe   : > { %s457_s26 = sshll.u32 %s643_s21, 2  ;;  %508 = vmatprep.subr.bf16.mxu1 %v553_v1 }
   0xf   : > { %s193_s29 = scalar_lea.vmem %s637_s0, %s457_s26  ;;  %s199_s22 = scalar_lea.vmem %s641_s4, %s457_s26 }
  0x10   : > { %v536_v6 = vld [vmem:[%s193_s29] sm:$0xff]  }
  0x11   : > { %501 = vmatmul.mubr.msk.bf16.vlgmr.msra.gmra.mrb[0].mxu0 %vm232_vm1, %v536_v6  ;;  %509 = vmatpush3.bf16.msra.mxu1 %v539_v5 }
  0x12   : > { %510 = vmatprep.subr.bf16.mxu1 %v553_v1 }
  0x15   : > { %511 = vmatpush3.bf16.msra.mxu1 %v540_v7 }
  0x16   : > { %512 = vmatprep.subr.bf16.mxu1 %v553_v1 }
  0x19   : > { %513 = vmatpush3.bf16.msra.mxu1 %v541_v8 }
  0x1a   : > { %514 = vmatprep.subr.bf16.mxu1 %v553_v1 }
  0x1d   : > { %515 = vmatpush3.bf16.msra.mxu1 %v542_v9 }
  0x1e   : > { %516 = vmatprep.subr.bf16.mxu1 %v553_v1 }
  0x21   : > { %517 = vmatpush3.bf16.msra.mxu1 %v543_v10 }
  0x22   : > { %518 = vmatprep.subr.bf16.mxu1 %v553_v1 }
  0x25   : > { %519 = vmatpush3.bf16.msra.mxu1 %v544_v11 }
  0xe4   : > { %v270_v13 = vpop.f32.mrb[0].mxu0 }
  0xe5   : > { %v271_v14 = vadd.f32 %v460_v12, %v270_v13  ;;  %v502_v15 = vpop.f32.mrb[1].mxu0 }
  0xe6   : > { %v273_v16 = vpop.f32.mrb[2].mxu0 }
  0xe7   : > { %v274_v17 = vadd.f32 %v460_v12, %v273_v16  ;;  %v503_v18 = vpop.f32.mrb[3].mxu0  ;;  %v277_v19 = vmax.f32 %v271_v14, 0.0 }
  0xe9   : > { %v278_v20 = vmax.f32 %v274_v17, 0.0 }
  0xeb   : > { %v279_v21 = vpack.c.bf16 %v278_v20, %v277_v19 }
  0xed   : > { %521 = vmatmul.mubr.bf16.vlgmr.msra.gmra.mrb[0].mxu1 %v279_v21 }
 0x1c0   : > { %v378_v22 = vpop.f32.mrb[0].mxu1 }
 0x1c1   : > { %v522_v23 = vpop.f32.mrb[1].mxu1 }
 0x1c2   : > { %v381_v24 = vpop.f32.mrb[2].mxu1 }
 0x1c3   : > { %v482_v25 = vpack.c.bf16 %v381_v24, %v378_v22  ;;  %v523_v26 = vpop.f32.mrb[3].mxu1 }
 0x1c5   : > { %483 = vst [vmem:[%s199_s22] sm:$0xff] %v482_v25  }
 0x1c6 PF: > { %s14_s15 = sadd.s32 1, %s551_s15  }
 0x1c7   : > { %p11_p4 = scmp.ge.s32.totalorder %s14_s15, 4  }
 0x1c9   :  { %13 = sbr.rel (!%p11_p4) target bundleno = 1 (0x1), region = 66 }

</bundles_post_ra>
